<compile_context>
chip_gen: v6e
topology: v6e:2x2x1
jax: 0.10.0
libtpu: 0.0.40
codegen_flags: <defaults>
</compile_context>

<pallas_src>
import jax
import jax.numpy as jnp
import numpy as np
from jax.experimental import pallas as pl
from jax.experimental.pallas import tpu as pltpu


# ----------------------------------------------------------------------------
# Kernel: fused FFN for one row tile
# ----------------------------------------------------------------------------
def _ffn_kernel(x_ref, w1_ref, b1_ref, w2_ref, b2_ref, o_ref):
    # x_ref: (TM, d_model)   w1_ref: (d_model, d_ff)   b1_ref: (1, d_ff)
    # w2_ref: (d_ff, d_model) b2_ref: (1, d_model)     o_ref: (TM, d_model)
    h = jnp.dot(x_ref[...], w1_ref[...], preferred_element_type=jnp.float32)
    h = jnp.maximum(h + b1_ref[...], 0.0)
    # TODO(synk): dropout(h) omitted here (identity in eval mode).
    o = jnp.dot(h.astype(w2_ref.dtype), w2_ref[...],
                preferred_element_type=jnp.float32)
    o_ref[...] = (o + b2_ref[...]).astype(o_ref.dtype)


# ----------------------------------------------------------------------------
# Wrapper (the "module")
# ----------------------------------------------------------------------------
def positionwise_feed_forward(x, w1, b1, w2, b2, *, row_block=256):
    """x: (..., d_model).  w1: (d_model, d_ff), w2: (d_ff, d_model).

    Computes relu(x @ w1 + b1) @ w2 + b2 (dropout = identity, eval mode).
    Weights are stored "already transposed" relative to torch.nn.Linear.weight,
    i.e. w1 == linear1.weight.T — identical math.
    """
    orig_shape = x.shape
    d_model = orig_shape[-1]
    d_ff = w1.shape[1]
    M = int(np.prod(orig_shape[:-1]))

    # Lane-dense flattened view: all leading dims collapsed onto the row axis.
    x2 = x.reshape(M, d_model)
    b1_2d = b1.reshape(1, d_ff)
    b2_2d = b2.reshape(1, d_model)

    # Largest row tile up to row_block, kept a multiple of 8 (f32 sublane) when
    # the row count allows it; weights are small and stay fully resident.
    tm = min(row_block, M)
    if M >= 8 and tm % 8 != 0:
        tm = (tm // 8) * 8
    grid = (pl.cdiv(M, tm),)

    out = pl.pallas_call(
        _ffn_kernel,
        out_shape=jax.ShapeDtypeStruct((M, d_model), x.dtype),
        grid_spec=pltpu.PrefetchScalarGridSpec(
            num_scalar_prefetch=0,
            grid=grid,
            in_specs=[
                pl.BlockSpec((tm, d_model), lambda i: (i, 0)),      # x row tile
                pl.BlockSpec((d_model, d_ff), lambda i: (0, 0)),    # W1 resident
                pl.BlockSpec((1, d_ff), lambda i: (0, 0)),          # b1 resident
                pl.BlockSpec((d_ff, d_model), lambda i: (0, 0)),    # W2 resident
                pl.BlockSpec((1, d_model), lambda i: (0, 0)),       # b2 resident
            ],
            out_specs=pl.BlockSpec((tm, d_model), lambda i: (i, 0)),
        ),
        compiler_params=pltpu.CompilerParams(
            # single independent row axis -> shard across TCs on v7x
            dimension_semantics=("parallel",),
            # above the 32 MiB scoped default, below v7x's 64 MiB physical
            vmem_limit_bytes=48 * 1024 * 1024,
        ),
    )(x2, w1, b1_2d, w2, b2_2d)

    return out.reshape(orig_shape)


# ----------------------------------------------------------------------------
# Pure-numpy reference for validation
# ----------------------------------------------------------------------------
def _reference(x, w1, b1, w2, b2):
    xn = np.asarray(x, dtype=np.float32)
    shape = xn.shape
    xn = xn.reshape(-1, shape[-1])
    h = np.maximum(xn @ np.asarray(w1) + np.asarray(b1), 0.0)
    out = h @ np.asarray(w2) + np.asarray(b2)
    return out.reshape(shape[:-1] + (np.asarray(w2).shape[1],))


# ----------------------------------------------------------------------------
if __name__ == "__main__":
    key = jax.random.PRNGKey(0)
    k1, k2, k3, k4, k5 = jax.random.split(key, 5)

    # batch=2, windows=4, seq=16, d_model=32, d_ff=64 (small, forward-consistent)
    B, W, S, D_MODEL, D_FF = 2, 4, 16, 32, 64

    x = jax.random.normal(k1, (B, W, S, D_MODEL), dtype=jnp.float32)
    w1 = jax.random.normal(k2, (D_MODEL, D_FF), dtype=jnp.float32) * 0.1
    b1 = jax.random.normal(k3, (D_FF,), dtype=jnp.float32) * 0.1
    w2 = jax.random.normal(k4, (D_FF, D_MODEL), dtype=jnp.float32) * 0.1
    b2 = jax.random.normal(k5, (D_MODEL,), dtype=jnp.float32) * 0.1

    # row_block=64 -> grid=(2,) so the row-tiling / index_map path is exercised
    out = positionwise_feed_forward(x, w1, b1, w2, b2, row_block=64)
    out = jax.block_until_ready(out)

    ref = _reference(x, w1, b1, w2, b2)
    if np.allclose(np.asarray(out), ref, atol=2e-3, rtol=2e-3):
        print("KERNEL_OK")
    else:
        err = float(np.max(np.abs(np.asarray(out) - ref)))
        print(f"MISMATCH max_abs_err={err}")
</pallas_src>

<mosaic_0001>
module attributes {stable_mosaic.version = 11 : i64} {
  func.func @_ffn_kernel(%arg0: i32, %arg1: memref<64x32xf32, #tpu.memory_space<vmem>>, %arg2: memref<32x64xf32, #tpu.memory_space<vmem>>, %arg3: memref<1x64xf32, #tpu.memory_space<vmem>>, %arg4: memref<64x32xf32, #tpu.memory_space<vmem>>, %arg5: memref<1x32xf32, #tpu.memory_space<vmem>>, %arg6: memref<64x32xf32, #tpu.memory_space<vmem>>) attributes {dimension_semantics = [#tpu.dimension_semantics<parallel>], iteration_bounds = array<i64: 2>, scalar_prefetch = 0 : i64, scratch_operands = 0 : i64, tpu.core_type = #tpu.core_type<tc>, window_params = [{transform_indices = @transform_0, window_bounds = array<i64: 64, 32>}, {pipeline_mode = #tpu.pipeline_mode<synchronous>, transform_indices = @transform_1, window_bounds = array<i64: 32, 64>}, {pipeline_mode = #tpu.pipeline_mode<synchronous>, transform_indices = @transform_2, window_bounds = array<i64: 1, 64>}, {pipeline_mode = #tpu.pipeline_mode<synchronous>, transform_indices = @transform_3, window_bounds = array<i64: 64, 32>}, {pipeline_mode = #tpu.pipeline_mode<synchronous>, transform_indices = @transform_4, window_bounds = array<i64: 1, 32>}, {transform_indices = @transform_5, window_bounds = array<i64: 64, 32>}]} {
    %c0 = arith.constant 0 : index
    %c0_0 = arith.constant 0 : index
    %0 = vector.load %arg1[%c0, %c0_0] : memref<64x32xf32, #tpu.memory_space<vmem>>, vector<64x32xf32>
    %c0_1 = arith.constant 0 : index
    %c0_2 = arith.constant 0 : index
    %1 = vector.load %arg2[%c0_1, %c0_2] : memref<32x64xf32, #tpu.memory_space<vmem>>, vector<32x64xf32>
    %cst = arith.constant dense<0.000000e+00> : vector<64x64xf32>
    %2 = tpu.matmul %0, %1, %cst {dimension_numbers = #tpu.dot_dimension_numbers<[1], [0], [0], [1], [0, 0, 1, 1], [], []>} : vector<64x32xf32>, vector<32x64xf32>, vector<64x64xf32> -> vector<64x64xf32>
    %c0_3 = arith.constant 0 : index
    %c0_4 = arith.constant 0 : index
    %3 = vector.load %arg3[%c0_3, %c0_4] : memref<1x64xf32, #tpu.memory_space<vmem>>, vector<1x64xf32>
    %4 = vector.broadcast %3 : vector<1x64xf32> to vector<64x64xf32>
    %5 = arith.addf %2, %4 : vector<64x64xf32>
    %cst_5 = arith.constant 0.000000e+00 : f32
    %6 = vector.broadcast %cst_5 : f32 to vector<64x64xf32>
    %7 = arith.maximumf %5, %6 : vector<64x64xf32>
    %c0_6 = arith.constant 0 : index
    %c0_7 = arith.constant 0 : index
    %8 = vector.load %arg4[%c0_6, %c0_7] : memref<64x32xf32, #tpu.memory_space<vmem>>, vector<64x32xf32>
    %cst_8 = arith.constant dense<0.000000e+00> : vector<64x32xf32>
    %9 = tpu.matmul %7, %8, %cst_8 {dimension_numbers = #tpu.dot_dimension_numbers<[1], [0], [0], [1], [0, 0, 1, 1], [], []>} : vector<64x64xf32>, vector<64x32xf32>, vector<64x32xf32> -> vector<64x32xf32>
    %c0_9 = arith.constant 0 : index
    %c0_10 = arith.constant 0 : index
    %10 = vector.load %arg5[%c0_9, %c0_10] : memref<1x32xf32, #tpu.memory_space<vmem>>, vector<1x32xf32>
    %11 = vector.broadcast %10 : vector<1x32xf32> to vector<64x32xf32>
    %12 = arith.addf %9, %11 : vector<64x32xf32>
    %c0_11 = arith.constant 0 : index
    %c0_12 = arith.constant 0 : index
    %13 = vector.load %arg6[%c0_11, %c0_12] : memref<64x32xf32, #tpu.memory_space<vmem>>, vector<64x32xf32>
    tpu.vector_store %arg6[%c0_11, %c0_12], %12 {strides = array<i32>} : memref<64x32xf32, #tpu.memory_space<vmem>>, vector<64x32xf32>,
    return
  }
  func.func @transform_0(%arg0: i32) -> (i32, i32) {
    %c0_i32 = arith.constant 0 : i32
    %c0_i32_0 = arith.constant 0 : i32
    return %arg0, %c0_i32 : i32, i32
  }
  func.func @transform_1(%arg0: i32) -> (i32, i32) {
    %c0_i32 = arith.constant 0 : i32
    %c0_i32_0 = arith.constant 0 : i32
    %c0_i32_1 = arith.constant 0 : i32
    return %c0_i32, %c0_i32_0 : i32, i32
  }
  func.func @transform_2(%arg0: i32) -> (i32, i32) {
    %c0_i32 = arith.constant 0 : i32
    %c0_i32_0 = arith.constant 0 : i32
    %c0_i32_1 = arith.constant 0 : i32
    return %c0_i32, %c0_i32_0 : i32, i32
  }
  func.func @transform_3(%arg0: i32) -> (i32, i32) {
    %c0_i32 = arith.constant 0 : i32
    %c0_i32_0 = arith.constant 0 : i32
    %c0_i32_1 = arith.constant 0 : i32
    return %c0_i32, %c0_i32_0 : i32, i32
  }
  func.func @transform_4(%arg0: i32) -> (i32, i32) {
    %c0_i32 = arith.constant 0 : i32
    %c0_i32_0 = arith.constant 0 : i32
    %c0_i32_1 = arith.constant 0 : i32
    return %c0_i32, %c0_i32_0 : i32, i32
  }
  func.func @transform_5(%arg0: i32) -> (i32, i32) {
    %c0_i32 = arith.constant 0 : i32
    %c0_i32_0 = arith.constant 0 : i32
    return %arg0, %c0_i32 : i32, i32
  }
}

</mosaic_0001>

<bundles_post_ra>
// kernel: tpu_custom_call.1
= control target key start
LH: loop header
LB: loop body
LE: loop exit
PB: predicated region body
PF: predicated region fallthrough
CT: control target
= control target key end

     0   :  { %s761_s18 = smov 0   ;;  %s851_s0 = inlined_call_operand.vmem [shape: f32[128,32], index: 0, kind: input, shape index: {}]   ;;  %s852_s1 = inlined_call_operand.vmem [shape: f32[32,64], index: 1, kind: input, shape index: {}]   ;;  %s853_s2 = inlined_call_operand.vmem [shape: f32[1,64], index: 2, kind: input, shape index: {}]   ;;  %s854_s3 = inlined_call_operand.vmem [shape: f32[64,32], index: 3, kind: input, shape index: {}]   ;;  %s855_s4 = inlined_call_operand.vmem [shape: f32[1,32], index: 4, kind: input, shape index: {}]   ;;  %s856_s5 = inlined_call_operand.vmem [shape: f32[128,32], index: 5, kind: output, shape index: {}]  }
   0x1 LB: > { %s594_s19 = sadd.s32 4294967295, %s729_s18   ;;  %p598_p0 = scmp.ge.s32.totalorder %s729_s18, 1  ;;  %s729_s18 = sphi %s761_s18, %s15_s18  }
   0x2   : > { %p188_p1 = scmp.lt.s32.totalorder %s729_s18, 3 }
   0x4   : > { %p189_p2 = pnand %p598_p0, %p188_p1 }
   0x5   : > { %s599_s24 = sshll.u32 (!%p189_p2), %s594_s19, 3 }
   0x6   : > { %192 = sbr.rel (%p189_p2) target bundleno = 430 (0x1ae), region = 40  ;;  %p217_p3 = scmp.lt.s32.totalorder (!%p189_p2), %s599_s24, 15 }
   0xb   : > { %v239_v0 = vld [vmem:[%s852_s1 + $0x18] sm:$0xff]  ;;  %v238_v1 = vld [vmem:[%s852_s1 + $0x10] sm:$0xff]  ;;  %v237_v3 = vld [vmem:[%s852_s1 + $0x8] sm:$0xff]  ;;  %s858_s24 = smov (!%p217_p3, %s599_s24), 15  ;;  %vm247_vm0 = vcmask 261120   ;;  %vm400_vm1 = vcmask 523264  }
   0xc   : > { %651 = vmatprep.subr.mxu0 %v239_v0  ;;  %v392_v2 = vld [vmem:[%s854_s3 + $0x38] sm:$0xff]  ;;  %v391_v4 = vld [vmem:[%s854_s3 + $0x30] sm:$0xff]  ;;  %v236_v5 = vld [vmem:[%s852_s1] sm:$0xff]  ;;  %s600_s8 = sshll.u32 %s858_s24, 3 }
   0xd   : > { %652 = vmatpush3.msra.mxu0 %v239_v0  ;;  %699 = vmatprep.subr.mxu1 %v392_v2  ;;  %v390_v6 = vld [vmem:[%s854_s3 + $0x28] sm:$0xff]  ;;  %s220_s13 = scalar_lea.vmem %s851_s0, %s600_s8  ;;  %v389_v11 = vld [vmem:[%s854_s3 + $0x20] sm:$0xff]  ;;  %v388_v16 = vld [vmem:[%s854_s3 + $0x18] sm:$0xff]  ;;  %s226_s7 = scalar_lea.vmem %s856_s5, %s600_s8 }
   0xe   : > { %653 = vmatprep.subr.mxu0 %v238_v1  ;;  %707 = vmatpush3.msra.mxu1 %v392_v2  ;;  %v228_v7 = vld [vmem:[%s220_s13] sm:$0xff]  ;;  %v229_v8 = vld [vmem:[%s220_s13 + $0x8] sm:$0xff]  ;;  %v230_v9 = vld [vmem:[%s220_s13 + $0x10] sm:$0xff] }
   0xf   : > { %654 = vmatpush3.msra.mxu0 %v238_v1  ;;  %700 = vmatprep.subr.mxu1 %v391_v4  ;;  %v231_v10 = vld [vmem:[%s220_s13 + $0x18] sm:$0xff]  ;;  %v232_v12 = vld [vmem:[%s220_s13 + $0x20] sm:$0xff]  ;;  %v233_v13 = vld [vmem:[%s220_s13 + $0x28] sm:$0xff] }
  0x10   : > { %655 = vmatprep.subr.mxu0 %v237_v3  ;;  %708 = vmatpush3.msra.mxu1 %v391_v4  ;;  %v234_v14 = vld [vmem:[%s220_s13 + $0x30] sm:$0xff]  ;;  %v235_v15 = vld [vmem:[%s220_s13 + $0x38] sm:$0xff]  ;;  %v386_v18 = vld [vmem:[%s854_s3 + $0x8] sm:$0xff] }
  0x11   : > { %656 = vmatpush3.msra.mxu0 %v237_v3  ;;  %701 = vmatprep.subr.mxu1 %v390_v6  ;;  %v387_v17 = vld [vmem:[%s854_s3 + $0x10] sm:$0xff]  ;;  %v385_v19 = vld [vmem:[%s854_s3] sm:$0xff] }
  0x12   : > { %657 = vmatprep.subr.mxu0 %v236_v5  ;;  %709 = vmatpush3.msra.mxu1 %v390_v6  ;;  %v603_v20 = vld [vmem:[%s853_s2] ss:$0 sm:$0xff] }
  0x13   : > { %658 = vmatpush3.msra.mxu0 %v236_v5  ;;  %659 = vmatprep.mubr.msk.f32.mxu0 %vm247_vm0, %v228_v7  ;;  %v612_v45 = vld [vmem:[%s855_s4] ss:$0 sm:$0xff] }
  0x14   : > { %660 = vmatmul.mubr.msk.f32.vlgmr.msra.gmra.mxu0 %vm247_vm0, %v229_v8  ;;  %671 = vmatprep.subr.mxu0 %v392_v2 }
  0x15   : > { %662 = vmatprep.mubr.msk.f32.mxu0 %vm247_vm0, %v230_v9  ;;  %672 = vmatpush3.msra.mxu0 %v392_v2 }
  0x16   : > { %673 = vmatprep.subr.mxu0 %v391_v4  ;;  %702 = vmatprep.subr.mxu1 %v389_v11 }
  0x17   : > { %674 = vmatpush3.msra.mxu0 %v391_v4  ;;  %710 = vmatpush3.msra.mxu1 %v389_v11 }
  0x18   : > { %663 = vmatmul.mubr.msk.f32.gmra.mxu0 %vm247_vm0, %v231_v10  ;;  %675 = vmatprep.subr.mxu0 %v390_v6 }
  0x19   : > { %665 = vmatprep.mubr.msk.f32.mxu0 %vm247_vm0, %v232_v12  ;;  %676 = vmatpush3.msra.mxu0 %v390_v6 }
  0x1a   : > { %677 = vmatprep.subr.mxu0 %v389_v11  ;;  %703 = vmatprep.subr.mxu1 %v388_v16 }
  0x1b   : > { %678 = vmatpush3.msra.mxu0 %v389_v11  ;;  %711 = vmatpush3.msra.mxu1 %v388_v16 }
  0x1c   : > { %666 = vmatmul.mubr.msk.f32.gmra.mxu0 %vm247_vm0, %v233_v13  ;;  %679 = vmatprep.subr.mxu0 %v388_v16 }
  0x1d   : > { %668 = vmatprep.mubr.msk.f32.mxu0 %vm247_vm0, %v234_v14  ;;  %680 = vmatpush3.msra.mxu0 %v388_v16 }
  0x1e   : > { %681 = vmatprep.subr.mxu0 %v387_v17  ;;  %704 = vmatprep.subr.mxu1 %v387_v17 }
  0x1f   : > { %682 = vmatpush3.msra.mxu0 %v387_v17  ;;  %712 = vmatpush3.msra.mxu1 %v387_v17 }
  0x20   : > { %669 = vmatmul.mubr.msk.f32.gmra.mxu0 %vm247_vm0, %v235_v15  ;;  %683 = vmatprep.subr.mxu0 %v386_v18 }
  0x21   : > { %705 = vmatprep.subr.mxu1 %v386_v18  ;;  %684 = vmatpush3.msra.mxu0 %v386_v18 }
  0x22   : > { %713 = vmatpush3.msra.mxu1 %v386_v18  ;;  %685 = vmatprep.subr.mxu0 %v385_v19 }
  0x23   : > { %706 = vmatprep.subr.mxu1 %v385_v19  ;;  %686 = vmatpush3.msra.mxu0 %v385_v19 }
  0x24   : > { %714 = vmatpush3.msra.mxu1 %v385_v19 }
  0xd4   : > { %v661_v21 = vpop.f32.mrf.mxu0 }
  0xd5   : > { %v344_v22 = vadd.f32 %v661_v21, %v603_v20 }
  0xd6   : > { %v338_v23 = vpop.f32.mrf.mxu0 }
  0xd7   : > { %v339_v24 = vadd.f32 %v603_v20, %v338_v23  ;;  %v378_v27 = vmax.f32 %v344_v22, 0.0 }
  0xd8   : > { %v664_v25 = vpop.f32.mrf.mxu0 }
  0xd9   : > { %v377_v26 = vmax.f32 %v339_v24, 0.0  ;;  %v354_v28 = vadd.f32 %v664_v25, %v603_v20 }
  0xda   : > { %v348_v29 = vpop.f32.mrf.mxu0 }
  0xdb   : > { %v349_v30 = vadd.f32 %v603_v20, %v348_v29  ;;  %687 = vmatprep.mubr.msk.f32.mxu0 %vm400_vm1, %v377_v26  ;;  %v380_v33 = vmax.f32 %v354_v28, 0.0 }
  0xdc   : > { %v667_v31 = vpop.f32.mrf.mxu0  ;;  %688 = vmatmul.mubr.msk.f32.vlgmr.msra.gmra.mxu0 %vm400_vm1, %v378_v27 }
  0xdd   : > { %v379_v32 = vmax.f32 %v349_v30, 0.0  ;;  %v364_v34 = vadd.f32 %v667_v31, %v603_v20 }
  0xde   : > { %v358_v35 = vpop.f32.mrf.mxu0 }
  0xdf   : > { %v359_v36 = vadd.f32 %v603_v20, %v358_v35  ;;  %690 = vmatprep.mubr.msk.f32.mxu1 %vm400_vm1, %v379_v32  ;;  %v382_v39 = vmax.f32 %v364_v34, 0.0 }
  0xe0   : > { %v670_v37 = vpop.f32.mrf.mxu0  ;;  %691 = vmatmul.mubr.msk.f32.vlgmr.msra.gmra.mxu1 %vm400_vm1, %v380_v33 }
  0xe1   : > { %v381_v38 = vmax.f32 %v359_v36, 0.0  ;;  %v374_v40 = vadd.f32 %v670_v37, %v603_v20 }
  0xe2   : > { %v368_v41 = vpop.f32.mrf.mxu0 }
  0xe3   : > { %v369_v42 = vadd.f32 %v603_v20, %v368_v41  ;;  %693 = vmatprep.mubr.msk.f32.mxu1 %vm400_vm1, %v381_v38  ;;  %v384_v44 = vmax.f32 %v374_v40, 0.0 }
  0xe4   : > { %694 = vmatmul.mubr.msk.f32.gmra.mxu1 %vm400_vm1, %v382_v39 }
  0xe5   : > { %v383_v43 = vmax.f32 %v369_v42, 0.0 }
  0xe7   : > { %696 = vmatprep.mubr.msk.f32.mxu1 %vm400_vm1, %v383_v43 }
  0xe8   : > { %697 = vmatmul.mubr.msk.f32.gmra.mxu1 %vm400_vm1, %v384_v44 }
 0x19c   : > { %v689_v46 = vpop.f32.mrf.mxu0 }
 0x19d   : > { %v497_v47 = vadd.f32 %v689_v46, %v612_v45 }
 0x19e   : > { %v491_v48 = vpop.f32.mrf.mxu0 }
 0x19f   : > { %531 = vst.msk [vmem:[%s226_s7 + $0x8] sm:$0xff] %vm247_vm0, %v497_v47  ;;  %v492_v49 = vadd.f32 %v612_v45, %v491_v48 }
 0x1a0   : > { %v692_v50 = vpop.f32.mrf.mxu1 }
 0x1a1   : > { %530 = vst.msk [vmem:[%s226_s7] sm:$0xff] %vm247_vm0, %v492_v49  ;;  %v507_v51 = vadd.f32 %v692_v50, %v612_v45 }
 0x1a2   : > { %v501_v52 = vpop.f32.mrf.mxu1 }
 0x1a3   : > { %533 = vst.msk [vmem:[%s226_s7 + $0x18] sm:$0xff] %vm247_vm0, %v507_v51  ;;  %v502_v53 = vadd.f32 %v612_v45, %v501_v52 }
 0x1a4   : > { %v695_v54 = vpop.f32.mrf.mxu1 }
 0x1a5   : > { %532 = vst.msk [vmem:[%s226_s7 + $0x10] sm:$0xff] %vm247_vm0, %v502_v53  ;;  %v517_v55 = vadd.f32 %v695_v54, %v612_v45 }
 0x1a6   : > { %v511_v56 = vpop.f32.mrf.mxu1 }
 0x1a7   : > { %535 = vst.msk [vmem:[%s226_s7 + $0x28] sm:$0xff] %vm247_vm0, %v517_v55  ;;  %v512_v57 = vadd.f32 %v612_v45, %v511_v56 }
 0x1a8   : > { %v698_v58 = vpop.f32.mrf.mxu1 }
 0x1a9   : > { %534 = vst.msk [vmem:[%s226_s7 + $0x20] sm:$0xff] %vm247_vm0, %v512_v57  ;;  %v527_v59 = vadd.f32 %v698_v58, %v612_v45 }
 0x1aa   : > { %v521_v60 = vpop.f32.mrf.mxu1 }
 0x1ab   : > { %537 = vst.msk [vmem:[%s226_s7 + $0x38] sm:$0xff] %vm247_vm0, %v527_v59  ;;  %v522_v61 = vadd.f32 %v612_v45, %v521_v60 }
 0x1ad   : > { %536 = vst.msk [vmem:[%s226_s7 + $0x30] sm:$0xff] %vm247_vm0, %v522_v61 }
 0x1ae PF: > { %s15_s18 = sadd.s32 1, %s729_s18  }
 0x1af   : > { %p12_p4 = scmp.ge.s32.totalorder %s15_s18, 4  }
 0x1b1   :  { %14 = sbr.rel (!%p12_p4) target bundleno = 1 (0x1), region = 70 }

</bundles_post_ra>
